<compile_context>
chip_gen: v5e
topology: v5e:2x2
jax: 0.10.0
libtpu: 0.0.40
codegen_flags: <defaults>
</compile_context>

<pallas_src>
import functools

import jax
import jax.numpy as jnp
from jax import lax
from jax.experimental import pallas as pl
from jax.experimental.pallas import tpu as pltpu


LANE = 512                  # lane-dense last dim (multiple of 128)
SLAB_ROWS = 256             # in-kernel slab: bounds f32 temporaries to ~0.5 MiB each
MIN_PALLAS_ELEMS = 1 << 15  # below this, a fused XLA reduction beats pallas fixed cost


def _round_up(x, m):
    return ((x + m - 1) // m) * m


def _cdiv(a, b):
    return -(-a // b)


@functools.lru_cache(maxsize=None)
def _select_tuning():
    """(max_block_rows, vmem_limit_bytes) per TPU generation (safe fallback)."""
    try:
        vmem = pltpu.get_tpu_info().vmem_capacity_bytes
    except Exception:
        vmem = 64 * 1024 * 1024
    if vmem >= 96 * 1024 * 1024:
        # v5e / v6e: 128 MiB physical VMEM -> larger tile amortizes step overhead.
        return 4096, 64 * 1024 * 1024
    # v7x: 64 MiB per TensorCore -> 2048-row blocks (24 MiB double-buffered input).
    return 2048, 48 * 1024 * 1024


def _choose_block(rows, max_block_rows):
    """Pick (block_rows, slab_rows): >=2 grid steps, slab/sublane aligned."""
    target = _cdiv(rows, 2)          # at least 2 blocks -> v7x dual-TC sharding
    if target >= SLAB_ROWS:
        block_rows = min(max_block_rows, _round_up(target, SLAB_ROWS))
        slab_rows = SLAB_ROWS
    else:
        block_rows = max(16, _round_up(target, 16))   # 16: bf16 sublane packing
        slab_rows = block_rows
    return block_rows, slab_rows


def _make_kernel(rows, block_rows, slab_rows, lane, needs_mask):
    """Kernel reducing one (block_rows, lane) block to an (8, lane) partial."""
    n_slabs = block_rows // slab_rows

    def kernel(mask_ref, out_ref, gt_ref, partial_ref):
        # Valid rows of this block (static rows/block_rows baked in at trace time).
        remaining = rows - pl.program_id(0) * block_rows if needs_mask else None

        def slab_sum(start, acc):
            m = mask_ref[pl.ds(start, slab_rows), :].astype(jnp.float32)
            o = out_ref[pl.ds(start, slab_rows), :].astype(jnp.float32)
            t = gt_ref[pl.ds(start, slab_rows), :].astype(jnp.float32)
            a = jnp.abs(m * (o - t))               # one mul saved vs |m*o - m*g|
            if needs_mask:
                # Zero garbage rows of the (possibly partial) last block.
                row = lax.broadcasted_iota(jnp.int32, (slab_rows, lane), 0)
                a = jnp.where(row < (remaining - start), a, 0.0)
            # Vreg-aligned (8, lane) partial via pure VPU adds (no cross-lane reduce,
            # no SMEM scalar accumulation inside the kernel).
            return acc + jnp.sum(a.reshape(slab_rows // 8, 8, lane), axis=0)

        acc0 = jnp.zeros((8, lane), jnp.float32)
        if n_slabs == 1:
            partial_ref[...] = slab_sum(0, acc0)
        else:
            partial_ref[...] = lax.fori_loop(
                0, n_slabs,
                lambda i, acc: slab_sum(pl.multiple_of(i * slab_rows, slab_rows), acc),
                acc0,
                unroll=True,
            )

    return kernel


def valid_loss(mask, output, gt, *, min_pallas_elems=MIN_PALLAS_ELEMS):
    """Returns {'valid': scalar} matching ValidLoss.forward semantics."""
    N, C, H, W = output.shape
    total = N * C * H * W
    inv_per_channel = 1.0 / float(N * H * W)

    # Fallback: tiny inputs (pallas fixed cost dominates) or lane-misaligned
    # totals (no zero-copy (rows, LANE) view exists; padding would roughly
    # triple HBM traffic).  XLA fuses this into a single-pass reduction.
    if total < min_pallas_elems or total % LANE != 0:
        m = mask.astype(jnp.float32)
        d = output.astype(jnp.float32) - gt.astype(jnp.float32)
        return {"valid": jnp.sum(jnp.abs(m * d), dtype=jnp.float32) * inv_per_channel}

    max_block_rows, vmem_limit = _select_tuning()
    rows = total // LANE
    block_rows, slab_rows = _choose_block(rows, max_block_rows)
    grid = _cdiv(rows, block_rows)
    needs_mask = (rows % block_rows) != 0

    # Zero-copy, lane-dense 2D views (no jnp.pad, no materialized copies).
    # Dtypes stay narrow in HBM; the kernel upcasts to f32 in VMEM.
    m2 = mask.reshape(rows, LANE)
    o2 = output.reshape(rows, LANE)
    g2 = gt.reshape(rows, LANE)

    in_spec = pl.BlockSpec((block_rows, LANE), lambda g: (g, 0))
    # Per-block lane-dense partials: (8, LANE) keeps stores unmasked and the
    # single grid axis fully independent ("parallel" -> v7x dual-TC sharding).
    out_spec = pl.BlockSpec((8, LANE), lambda g: (g, 0))

    partials = pl.pallas_call(
        _make_kernel(rows, block_rows, slab_rows, LANE, needs_mask),
        out_shape=jax.ShapeDtypeStruct((8 * grid, LANE), jnp.float32),
        grid_spec=pltpu.PrefetchScalarGridSpec(
            num_scalar_prefetch=0,
            grid=(grid,),
            in_specs=[in_spec, in_spec, in_spec],
            out_specs=out_spec,
        ),
        compiler_params=pltpu.CompilerParams(
            dimension_semantics=("parallel",),
            vmem_limit_bytes=vmem_limit,
        ),
    )(m2, o2, g2)

    # Single global scale: sum_c mean_c == total_sum / (N*H*W).
    return {"valid": jnp.sum(partials, dtype=jnp.float32) * inv_per_channel}


def valid_loss_ref(mask, output, gt):
    """Pure-JAX reference mirroring the PyTorch per-channel loop (f32 math)."""
    total = 0.0
    for c in range(output.shape[1]):
        m = mask[:, c, :, :].astype(jnp.float32)
        o = output[:, c, :, :].astype(jnp.float32)
        g = gt[:, c, :, :].astype(jnp.float32)
        total = total + jnp.mean(jnp.abs(m * o - m * g))
    return total


if __name__ == "__main__":
    root = jax.random.PRNGKey(0)

    def check(shape, dtype, tol, case_key):
        k1, k2, k3 = jax.random.split(case_key, 3)
        mask = (jax.random.uniform(k1, shape) > 0.5).astype(dtype)
        output = jax.random.normal(k2, shape).astype(dtype)
        gt = jax.random.normal(k3, shape).astype(dtype)
        got = jax.block_until_ready(valid_loss(mask, output, gt)["valid"])
        ref = jax.block_until_ready(valid_loss_ref(mask, output, gt))
        assert jnp.allclose(got, ref, rtol=tol, atol=tol), (shape, dtype, got, ref)

    keys = jax.random.split(root, 4)
    # Tiny (2, 4, 16, 16): fused-XLA fallback path.
    check((2, 4, 16, 16), jnp.float32, 1e-5, keys[0])
    # Pallas path, partial (row-masked) last block: 162 rows of 512 lanes, grid=2.
    check((2, 4, 72, 144), jnp.float32, 1e-5, keys[1])
    # Pallas path, multi-slab fori_loop: 1024 rows -> 512-row blocks, 2 slabs each.
    check((4, 4, 128, 256), jnp.float32, 1e-5, keys[2])
    # Pallas path with bf16 inputs (half the HBM bytes; in-kernel f32 upcast).
    check((2, 4, 64, 128), jnp.bfloat16, 2e-3, keys[3])

    print("KERNEL_OK")
</pallas_src>

<mosaic_0001>
module attributes {stable_mosaic.version = 11 : i64} {
  func.func @kernel(%arg0: i32, %arg1: memref<96x512xf32, #tpu.memory_space<vmem>>, %arg2: memref<96x512xf32, #tpu.memory_space<vmem>>, %arg3: memref<96x512xf32, #tpu.memory_space<vmem>>, %arg4: memref<8x512xf32, #tpu.memory_space<vmem>>) attributes {dimension_semantics = [#tpu.dimension_semantics<parallel>], iteration_bounds = array<i64: 2>, scalar_prefetch = 0 : i64, scratch_operands = 0 : i64, tpu.core_type = #tpu.core_type<tc>, window_params = [{transform_indices = @transform_0, window_bounds = array<i64: 96, 512>}, {transform_indices = @transform_1, window_bounds = array<i64: 96, 512>}, {transform_indices = @transform_2, window_bounds = array<i64: 96, 512>}, {transform_indices = @transform_3, window_bounds = array<i64: 8, 512>}]} {
    %c96_i32 = arith.constant 96 : i32
    %0 = arith.muli %arg0, %c96_i32 : i32
    %c162_i32 = arith.constant 162 : i32
    %1 = arith.subi %c162_i32, %0 : i32
    %cst = arith.constant 0.000000e+00 : f32
    %2 = vector.broadcast %cst : f32 to vector<8x512xf32>
    %c0 = arith.constant 0 : index
    %c0_0 = arith.constant 0 : index
    %3 = vector.load %arg1[%c0, %c0_0] : memref<96x512xf32, #tpu.memory_space<vmem>>, vector<96x512xf32>
    %c0_1 = arith.constant 0 : index
    %c0_2 = arith.constant 0 : index
    %4 = vector.load %arg2[%c0_1, %c0_2] : memref<96x512xf32, #tpu.memory_space<vmem>>, vector<96x512xf32>
    %c0_3 = arith.constant 0 : index
    %c0_4 = arith.constant 0 : index
    %5 = vector.load %arg3[%c0_3, %c0_4] : memref<96x512xf32, #tpu.memory_space<vmem>>, vector<96x512xf32>
    %6 = arith.subf %4, %5 : vector<96x512xf32>
    %7 = arith.mulf %3, %6 : vector<96x512xf32>
    %8 = math.absf %7 : vector<96x512xf32>
    %9 = tpu.iota {dimensions = array<i32: 0>} : vector<96x512xi32>
    %c0_i32 = arith.constant 0 : i32
    %10 = arith.subi %1, %c0_i32 : i32
    %11 = vector.broadcast %10 : i32 to vector<96x512xi32>
    %12 = arith.cmpi slt, %9, %11 : vector<96x512xi32>
    %cst_5 = arith.constant 0.000000e+00 : f32
    %13 = vector.broadcast %cst_5 : f32 to vector<96x512xf32>
    %14 = arith.select %12, %8, %13 : vector<96x512xi1>, vector<96x512xf32>
    %15 = vector.shape_cast %14 : vector<96x512xf32> to vector<12x8x512xf32>
    %cst_6 = arith.constant dense<0.000000e+00> : vector<8x512xf32>
    %16 = vector.multi_reduction <add>, %15, %cst_6 [0] : vector<12x8x512xf32> to vector<8x512xf32>
    %17 = arith.addf %2, %16 : vector<8x512xf32>
    %c0_7 = arith.constant 0 : index
    %c0_8 = arith.constant 0 : index
    %18 = vector.load %arg4[%c0_7, %c0_8] : memref<8x512xf32, #tpu.memory_space<vmem>>, vector<8x512xf32>
    tpu.vector_store %arg4[%c0_7, %c0_8], %17 {strides = array<i32>} : memref<8x512xf32, #tpu.memory_space<vmem>>, vector<8x512xf32>,
    return
  }
  func.func @transform_0(%arg0: i32) -> (i32, i32) {
    %c0_i32 = arith.constant 0 : i32
    %c0_i32_0 = arith.constant 0 : i32
    return %arg0, %c0_i32 : i32, i32
  }
  func.func @transform_1(%arg0: i32) -> (i32, i32) {
    %c0_i32 = arith.constant 0 : i32
    %c0_i32_0 = arith.constant 0 : i32
    return %arg0, %c0_i32 : i32, i32
  }
  func.func @transform_2(%arg0: i32) -> (i32, i32) {
    %c0_i32 = arith.constant 0 : i32
    %c0_i32_0 = arith.constant 0 : i32
    return %arg0, %c0_i32 : i32, i32
  }
  func.func @transform_3(%arg0: i32) -> (i32, i32) {
    %c0_i32 = arith.constant 0 : i32
    %c0_i32_0 = arith.constant 0 : i32
    return %arg0, %c0_i32 : i32, i32
  }
}

</mosaic_0001>

<bundles_post_ra>
// kernel: tpu_custom_call.1
= control target key start
LH: loop header
LB: loop body
LE: loop exit
PB: predicated region body
PF: predicated region fallthrough
CT: control target
= control target key end

     0   :  { %8 = vsyncpa [#allocation3], 0  ;;  %s2465_s0 = inlined_call_operand.hbm [shape: f32[162,512], index: 0, kind: input, shape index: {}]   ;;  %s2466_s1 = inlined_call_operand.hbm [shape: f32[162,512], index: 1, kind: input, shape index: {}]   ;;  %s2467_s2 = inlined_call_operand.hbm [shape: f32[162,512], index: 2, kind: input, shape index: {}]   ;;  %s2468_s3 = inlined_call_operand.hbm [shape: f32[16,512], index: 3, kind: output, shape index: {}]  }
   0x1   :  { %10 = vsyncpa [#allocation3 + $0x1], 0 }
   0x2   :  { %11 = vsyncpa [#allocation6], 0 }
   0x3   :  { %13 = vsyncpa [#allocation6 + $0x1], 0 }
   0x4   :  { %14 = vsyncpa [#allocation4], 0 }
   0x5   :  { %16 = vsyncpa [#allocation4 + $0x1], 0  ;;  %s1177_s12 = smov 0   ;;  %s1179_s13 = smov 0  }
   0x6   :  { %s1181_s14 = smov 0   ;;  %s1183_s15 = smov 0  }
   0x7 LB: > { %s1198_s16 = sadd.s32 4294967295, %s1146_s15   ;;  %s863_s17 = sadd.s32 4294967294, %s1146_s15   ;;  %s1146_s15 = sphi %s1183_s15, %s2763_s15   ;;  %s1142_s14 = sphi %s1181_s14, %s2762_s14   ;;  %s1138_s13 = sphi %s1179_s13, %s2761_s13   ;;  %s1134_s12 = sphi %s1177_s12, %s2760_s12  }
   0x8   : > { %s1202_s18 = sadd.s32 1, %s1146_s15   ;;  %s29_s19 = sadd.s32 1, %s1142_s14 }
   0x9   : > { %s26_s20 = ssub.s32 %s1146_s15, %s1202_s18  ;;  %p36_p0 = scmp.ne.s32.totalorder %s1142_s14, %s1138_s13 }
   0xa   : > { %p27_p1 = scmp.eq.s32.totalorder %s26_s20, 0  ;;  %p37_p2 = scmp.eq.s32.totalorder %s1146_s15, 0 }
   0xb   : > { %p42_p3 = scmp.ne.s32.totalorder %s1138_s13, %s1134_s12  ;;  %p43_p4 = scmp.eq.s32.totalorder %s1198_s16, 0 }
   0xc   : > { %s1214_s21 = scalar_select %p27_p1, %s1142_s14, %s29_s19  }
   0xd   : > { %p1216_p5 = por %p37_p2, %p36_p0  ;;  %p1220_p6 = por %p43_p4, %p42_p3 }
   0xe   : > { %p118_p7 = scmp.eq.s32.totalorder %s1198_s16, 1  ;;  %p124_p8 = scmp.eq.s32.totalorder %s863_s17, 1 }
   0xf   : > { %p2469_p11 = scmp.ge.s32.totalorder %s1146_s15, 2 }
  0x10   : > { %p1225_p9 = por %p118_p7, %p36_p0  ;;  %p1229_p10 = por %p124_p8, %p42_p3 }
  0x11   : > { %140 = sbr.rel (%p2469_p11) target bundleno = 136 (0x88), region = 16 }
  0x12   : > { %s2537_s25 = scalar_select %p1229_p10, 1, 0 }
  0x16   : > { %143 = sbr.rel (!%p1216_p5) target bundleno = 60 (0x3c), region = 20  ;;  %s144_s26 = sand.u32 (%p1216_p5), 1, %s1142_s14  }
  0x17   : > { %s149_s27 = smul.u32 (%p1216_p5), 12, %s1146_s15  ;;  %s1243_s6 = scalar_lea.sflag (%p1216_p5), [#allocation3], %s144_s26 }
  0x18   : > { %s907_s28 = smul.u32 (%p1216_p5), 384, %s144_s26 }
  0x19   : > { %s150_s29 = ssub.s32 (%p1216_p5), 21, %s149_s27 }
  0x1a   : > { %p151_p12 = scmp.lt.s32.totalorder (%p1216_p5), %s150_s29, 12  ;;  %s148_s7 = scalar_lea.vmem (%p1216_p5), [#allocation2], %s907_s28 }
  0x1c   : > { %s2765_s29 = smov (!%p151_p12, %s150_s29), 12 }
  0x1d   : > { %s894_s30 = sshll.u32 %s2765_s29, 5 }
  0x1e   : > { %s155_s4 = ssub.s32 384, %s894_s30 }
  0x1f   : > { %s156_s5 = sshll.u32 %s155_s4, 4 }
  0x20   : > { %157 = vsyncadd %s1243_s6, %s156_s5  ;;  %p1246_p13 = scmp.ne.s32.totalorder %s894_s30, 0  ;;  %s904_s9 = smul.u32 384, %s1146_s15 }
  0x21   : > { %s1251_s10 = sshll.u32 %s148_s7, 4  ;;  %s872_s11 = sshll.u32 %s2765_s29, 9  ;;  %s166_s10 = int_to_ptr.vmem [resolvable:$true] %s1251_s10 }
  0x22   : > { %s161_s20 = scalar_lea.hbm %s2465_s0, %s904_s9  ;;  %s961_s28 = sshrl.u32 %s872_s11, 4 }
  0x23   : > { %s163_s26 = sshll.u32 %s161_s20, 4  ;;  %s970_s7 = scalar_lea.hbm %s2465_s0, 672  ;;  %s1258_s26 = int_to_ptr.hbm [resolvable:$true] %s163_s26 }
  0x24   : > { %s959_s27 = sshra.s32 %s1258_s26, 4  ;;  %s960_s27 = int_to_ptr.hbm [resolvable:$true] %s959_s27 }
  0x25   : > { %s966_s30 = scalar_lea.hbm %s960_s27, %s961_s28  ;;  %p971_p3 = scmp.lt.s32.totalorder %s960_s27, %s2465_s0 }
  0x26   : > { %p967_p0 = scmp.ne.s32.totalorder %s960_s27, %s966_s30  ;;  %p972_p4 = scmp.lt.s32.totalorder %s970_s7, %s966_s30 }
  0x28   : > { %p968_p1 = pnand %p967_p0, %p1246_p13  ;;  %p973_p7 = por %p972_p4, %p971_p3 }
  0x2a   : > { %p969_p2 = pneg %p968_p1 }
  0x2c   : > { %p974_p8 = pnand %p973_p7, %p969_p2 }
  0x2e   : > { %977 = shalt.err (!%p974_p8)
}
  0x2f   : > { %s978_s19 = sshra.s32 %s166_s10, 4  ;;  %s1148_s4 = smov [#allocation2]   ;;  %s979_s19 = int_to_ptr.vmem [resolvable:$true] %s978_s19 }
  0x30   : > { %s985_s20 = scalar_lea.vmem %s979_s19, %s961_s28  ;;  %s989_s5 = scalar_lea.vmem %s1148_s4, 768 }
  0x31   : > { %p986_p12 = scmp.ne.s32.totalorder %s979_s19, %s985_s20  ;;  %p991_p11 = scmp.lt.s32.totalorder %s989_s5, %s985_s20 }
  0x33   : > { %p987_p0 = pnand %p986_p12, %p1246_p13 }
  0x35   : > { %p988_p1 = pneg %p987_p0 }
  0x37   : > { %p993_p10 = pnand %p991_p11, %p988_p1 }
  0x39   : > { %996 = shalt.err (!%p993_p10)
}
  0x3a   : > { %s1149_s27 = smov 512   ;;  %s1150_s30 = smov 32  }
  0x3b   : > { %171 = dma.hbm_to_vmem [thread:$0]  (%p1246_p13), %s1258_s26, %s872_s11, %s166_s10, %s1243_s6, %s1149_s27, %s1149_s27, %s1150_s30  }
  0x3c PF: > { %174 = sbr.rel (!%p1216_p5) target bundleno = 98 (0x62), region = 24  ;;  %s175_s28 = sand.u32 (%p1216_p5), 1, %s1146_s15  }
  0x3d   : > { %s177_s7 = sand.u32 (%p1216_p5), 1, %s1142_s14   ;;  %s180_s9 = smul.u32 (%p1216_p5), 12, %s1146_s15 }
  0x3e   : > { %s908_s17 = smul.u32 (%p1216_p5), 384, %s177_s7  ;;  %s1291_s6 = scalar_lea.sflag (%p1216_p5), [#allocation6], %s175_s28 }
  0x3f   : > { %s181_s19 = ssub.s32 (%p1216_p5), 21, %s180_s9 }
  0x40   : > { %p182_p10 = scmp.lt.s32.totalorder (%p1216_p5), %s181_s19, 12  ;;  %s179_s10 = scalar_lea.vmem (%p1216_p5), [#allocation5], %s908_s17 }
  0x42   : > { %s2767_s19 = smov (!%p182_p10, %s181_s19), 12 }
  0x43   : > { %s897_s8 = sshll.u32 %s2767_s19, 5 }
  0x44   : > { %s186_s20 = ssub.s32 384, %s897_s8 }
  0x45   : > { %s187_s29 = sshll.u32 %s186_s20, 4 }
  0x46   : > { %188 = vsyncadd %s1291_s6, %s187_s29  ;;  %p1294_p11 = scmp.ne.s32.totalorder %s897_s8, 0  ;;  %s905_s26 = smul.u32 384, %s1146_s15 }
  0x47   : > { %s1299_s4 = sshll.u32 %s179_s10, 4  ;;  %s879_s5 = sshll.u32 %s2767_s19, 9  ;;  %s197_s4 = int_to_ptr.vmem [resolvable:$true] %s1299_s4 }
  0x48   : > { %s192_s28 = scalar_lea.hbm %s2466_s1, %s905_s26  ;;  %s1000_s9 = sshrl.u32 %s879_s5, 4 }
  0x49   : > { %s194_s7 = sshll.u32 %s192_s28, 4  ;;  %s1009_s10 = scalar_lea.hbm %s2466_s1, 672  ;;  %s1306_s7 = int_to_ptr.hbm [resolvable:$true] %s194_s7 }
  0x4a   : > { %s998_s17 = sshra.s32 %s1306_s7, 4  ;;  %s999_s17 = int_to_ptr.hbm [resolvable:$true] %s998_s17 }
  0x4b   : > { %s1005_s8 = scalar_lea.hbm %s999_s17, %s1000_s9  ;;  %p1010_p4 = scmp.lt.s32.totalorder %s999_s17, %s2466_s1 }
  0x4c   : > { %p1006_p13 = scmp.ne.s32.totalorder %s999_s17, %s1005_s8  ;;  %p1011_p7 = scmp.lt.s32.totalorder %s1009_s10, %s1005_s8 }
  0x4e   : > { %p1007_p2 = pnand %p1006_p13, %p1294_p11  ;;  %p1012_p8 = por %p1011_p7, %p1010_p4 }
  0x50   : > { %p1008_p3 = pneg %p1007_p2 }
  0x52   : > { %p1013_p12 = pnand %p1012_p8, %p1008_p3 }
  0x54   : > { %1016 = shalt.err (!%p1013_p12)
}
  0x55   : > { %s1017_s30 = sshra.s32 %s197_s4, 4  ;;  %s1151_s20 = smov [#allocation5]   ;;  %s1018_s30 = int_to_ptr.vmem [resolvable:$true] %s1017_s30 }
  0x56   : > { %s1024_s28 = scalar_lea.vmem %s1018_s30, %s1000_s9  ;;  %s1028_s29 = scalar_lea.vmem %s1151_s20, 768 }
  0x57   : > { %p1025_p0 = scmp.ne.s32.totalorder %s1018_s30, %s1024_s28  ;;  %p1030_p13 = scmp.lt.s32.totalorder %s1028_s29, %s1024_s28 }
  0x59   : > { %p1026_p1 = pnand %p1025_p0, %p1294_p11 }
  0x5b   : > { %p1027_p10 = pneg %p1026_p1 }
  0x5d   : > { %p1032_p2 = pnand %p1030_p13, %p1027_p10 }
  0x5f   : > { %1035 = shalt.err (!%p1032_p2)
}
  0x60   : > { %s1152_s17 = smov 512   ;;  %s1153_s8 = smov 32  }
  0x61   : > { %202 = dma.hbm_to_vmem [thread:$0]  (%p1294_p11), %s1306_s7, %s879_s5, %s197_s4, %s1291_s6, %s1152_s17, %s1152_s17, %s1153_s8  }
  0x62 PF: > { %205 = sbr.rel (!%p1216_p5) target bundleno = 136 (0x88), region = 28  ;;  %s206_s9 = sand.u32 (%p1216_p5), 1, %s1146_s15  }
  0x63   : > { %s208_s10 = sand.u32 (%p1216_p5), 1, %s1142_s14   ;;  %s211_s26 = smul.u32 (%p1216_p5), 12, %s1146_s15 }
  0x64   : > { %s909_s27 = smul.u32 (%p1216_p5), 384, %s208_s10  ;;  %s1339_s6 = scalar_lea.sflag (%p1216_p5), [#allocation6], %s206_s9 }
  0x65   : > { %s212_s30 = ssub.s32 (%p1216_p5), 21, %s211_s26 }
  0x66   : > { %p213_p3 = scmp.lt.s32.totalorder (%p1216_p5), %s212_s30, 12  ;;  %s210_s22 = scalar_lea.vmem (%p1216_p5), [#allocation7], %s909_s27 }
  0x68   : > { %s2769_s30 = smov (!%p213_p3, %s212_s30), 12 }
  0x69   : > { %s900_s11 = sshll.u32 %s2769_s30, 5 }
  0x6a   : > { %s217_s28 = ssub.s32 384, %s900_s11 }
  0x6b   : > { %s218_s19 = sshll.u32 %s217_s28, 4 }
  0x6c   : > { %219 = vsyncadd %s1339_s6, %s218_s19  ;;  %p1342_p5 = scmp.ne.s32.totalorder %s900_s11, 0  ;;  %s906_s5 = smul.u32 384, %s1146_s15 }
  0x6d   : > { %s1347_s7 = sshll.u32 %s210_s22, 4  ;;  %s886_s20 = sshll.u32 %s2769_s30, 9  ;;  %s228_s7 = int_to_ptr.vmem [resolvable:$true] %s1347_s7 }
  0x6e   : > { %s223_s8 = scalar_lea.hbm %s2467_s2, %s906_s5  ;;  %s1039_s27 = sshrl.u32 %s886_s20, 4 }
  0x6f   : > { %s225_s9 = sshll.u32 %s223_s8, 4  ;;  %s1048_s19 = scalar_lea.hbm %s2467_s2, 672  ;;  %s1354_s9 = int_to_ptr.hbm [resolvable:$true] %s225_s9 }
  0x70   : > { %s1037_s10 = sshra.s32 %s1354_s9, 4  ;;  %s1038_s10 = int_to_ptr.hbm [resolvable:$true] %s1037_s10 }
  0x71   : > { %s1044_s26 = scalar_lea.hbm %s1038_s10, %s1039_s27  ;;  %p1049_p8 = scmp.lt.s32.totalorder %s1038_s10, %s2467_s2 }
  0x72   : > { %p1045_p11 = scmp.ne.s32.totalorder %s1038_s10, %s1044_s26  ;;  %p1050_p12 = scmp.lt.s32.totalorder %s1048_s19, %s1044_s26 }
  0x74   : > { %p1046_p4 = pnand %p1045_p11, %p1342_p5  ;;  %p1051_p0 = por %p1050_p12, %p1049_p8 }
  0x76   : > { %p1047_p7 = pneg %p1046_p4 }
  0x78   : > { %p1052_p1 = pnand %p1051_p0, %p1047_p7 }
  0x7a   : > { %1055 = shalt.err (!%p1052_p1)
}
  0x7b   : > { %s1056_s29 = sshra.s32 %s228_s7, 4  ;;  %s1154_s8 = smov [#allocation7]   ;;  %s1057_s29 = int_to_ptr.vmem [resolvable:$true] %s1056_s29 }
  0x7c   : > { %s1063_s17 = scalar_lea.vmem %s1057_s29, %s1039_s27  ;;  %s1067_s11 = scalar_lea.vmem %s1154_s8, 768 }
  0x7d   : > { %p1064_p10 = scmp.ne.s32.totalorder %s1057_s29, %s1063_s17  ;;  %p1069_p3 = scmp.lt.s32.totalorder %s1067_s11, %s1063_s17 }
  0x7f   : > { %p1065_p13 = pnand %p1064_p10, %p1342_p5 }
  0x81   : > { %p1066_p2 = pneg %p1065_p13 }
  0x83   : > { %p1071_p11 = pnand %p1069_p3, %p1066_p2 }
  0x85   : > { %1074 = shalt.err (!%p1071_p11)
}
  0x86   : > { %s1155_s10 = smov 512   ;;  %s1156_s26 = smov 32  }
  0x87   : > { %233 = dma.hbm_to_vmem [thread:$0]  (%p1342_p5), %s1354_s9, %s886_s20, %s228_s7, %s1339_s6, %s1155_s10, %s1155_s10, %s1156_s26  }
  0x88 PF: > { %p887_p4 = scmp.ge.s32.totalorder %s1146_s15, 1  ;;  %p235_p7 = scmp.lt.s32.totalorder %s1146_s15, 3 }
  0x8a   : > { %p236_p8 = pnand %p887_p4, %p235_p7 }
  0x8c   : > { %239 = sbr.rel (%p236_p8) target bundleno = 282 (0x11a), region = 32 }
  0x91   : > { %s1382_s27 = sand.u32 1, %s1138_s13  }
  0x92   : > { %s910_s28 = smul.u32 384, %s1382_s27  ;;  %s242_s19 = scalar_lea.sflag [#allocation3], %s1382_s27 }
  0x94   : > { %s1386_s4 = scalar_lea.vmem [#allocation2], %s910_s28 }
  0x95   : > { %1121 = dma.done.wait (%p1220_p6), %s242_s19, 6144  }
  0x96   : > { %1123 = vsyncadd (%p1220_p6), %s242_s19, 4294961152  ;;  %s251_s30 = sand.u32 1, %s1198_s16   ;;  %s1393_s7 = scalar_lea.vmem [#allocation5], %s910_s28 }
  0x97   : > { %s252_s6 = scalar_lea.sflag [#allocation6], %s251_s30 }
  0x98   : > { %1125 = dma.done.wait (%p1220_p6), %s252_s6, 12288  }
  0x99   : > { %1127 = vsyncadd (%p1220_p6), %s252_s6, 4294955008  ;;  %v607_v0 = vlaneseq  ;;  %s317_s20 = smul.u32 96, %s1198_s16  ;;  %v1401_v1 = vld [vmem:[%s1393_s7] sm:$0xff]  ;;  %v1404_v2 = vld [vmem:[%s1393_s7 + $0x8] sm:$0xff]  ;;  %s1417_s23 = scalar_lea.vmem [#allocation7], %s910_s28 }
  0x9a   : > { %v1409_v4 = vld [vmem:[%s1393_s7 + $0x10] sm:$0xff]  ;;  %v1412_v5 = vld [vmem:[%s1393_s7 + $0x18] sm:$0xff]  ;;  %v1415_v6 = vld [vmem:[%s1393_s7 + $0x20] sm:$0xff]  ;;  %s888_s22 = sshll.u32 %s1382_s27, 5  ;;  %s903_s5 = sshll.u32 %s1198_s16, 5 }
  0x9b   : > { %v1406_v3 = vshrl.u32 %v607_v0, 7  ;;  %v1420_v7 = vld [vmem:[%s1417_s23] sm:$0xff]  ;;  %v1423_v8 = vld [vmem:[%s1393_s7 + $0x28] sm:$0xff]  ;;  %v1426_v9 = vld [vmem:[%s1393_s7 + $0x30] sm:$0xff]  ;;  %s1434_s9 = ssub.s32 162, %s317_s20  ;;  %s745_s17 = scalar_lea.hbm %s2468_s3, %s903_s5 }
  0x9c   : > { %v1429_v10 = vld [vmem:[%s1393_s7 + $0x38] sm:$0xff]  ;;  %v1432_v11 = vld [vmem:[%s1417_s23 + $0x8] sm:$0xff]  ;;  %v319_v12 = vld [vmem:[%s1386_s4] sm:$0xff]  ;;  %v463_v26 = vsub.f32 %v1401_v1, %v1420_v7  ;;  %v1541_v49 = vstv %s1434_s9  ;;  %s298_s8 = scalar_lea.vmem [#allocation8], %s888_s22  ;;  %s749_s10 = sshll.u32 %s745_s17, 4  ;;  %s750_s10 = int_to_ptr.hbm [resolvable:$true] %s749_s10 }
  0x9d   : > { %2541 = vst [vmem:[#allocation12_spill] sm:$0xff] %v1406_v3  ;;  %v1438_v13 = vld [vmem:[%s1393_s7 + $0x40] sm:$0xff]  ;;  %v1441_v14 = vld [vmem:[%s1393_s7 + $0x48] sm:$0xff]  ;;  %v1444_v15 = vld [vmem:[%s1393_s7 + $0x50] sm:$0xff]  ;;  %v1479_v27 = vadd.s32 8, %v1406_v3  ;;  %v464_v35 = vsub.f32 %v1404_v2, %v1432_v11  ;;  %v1505_v36 = vadd.s32 16, %v1406_v3 }
  0x9e   : > { %v1447_v16 = vld [vmem:[%s1417_s23 + $0x10] sm:$0xff]  ;;  %v1450_v17 = vld [vmem:[%s1417_s23 + $0x18] sm:$0xff]  ;;  %v1453_v18 = vld [vmem:[%s1417_s23 + $0x20] sm:$0xff]  ;;  %v1508_v37 = vadd.s32 24, %v1406_v3  ;;  %v1511_v38 = vadd.s32 32, %v1406_v3  ;;  %2551 = vst [vmem:[#allocation22_spill] sm:$0xff] %v1541_v49 }
  0x9f   : > { %v1456_v19 = vld [vmem:[%s1386_s4 + $0x8] sm:$0xff]  ;;  %v1459_v20 = vld [vmem:[%s1393_s7 + $0x58] sm:$0xff]  ;;  %v1462_v21 = vld [vmem:[%s1393_s7 + $0x60] sm:$0xff]  ;;  %2542 = vst [vmem:[#allocation13_spill] sm:$0xff] %v1479_v27  ;;  %v465_v46 = vsub.f32 %v1409_v4, %v1447_v16  ;;  %v466_v47 = vsub.f32 %v1412_v5, %v1450_v17  ;;  %v1571_v60 = vadd.s32 40, %v1406_v3  ;;  %v1600_v16 = vmul.f32 %v463_v26, %v319_v12  ;;  %s747_s11 = sshll.u32 %s298_s8, 4  ;;  %s748_s11 = int_to_ptr.vmem [resolvable:$true] %s747_s11 }
  0xa0   : > { %v1465_v22 = vld [vmem:[%s1393_s7 + $0x68] sm:$0xff]  ;;  %v1471_v24 = vld [vmem:[%s1417_s23 + $0x30] sm:$0xff]  ;;  %v1474_v25 = vld [vmem:[%s1417_s23 + $0x38] sm:$0xff]  ;;  %2545 = vst [vmem:[#allocation16_spill] sm:$0xff] %v1505_v36  ;;  %s734_s26 = scalar_lea.sflag [#allocation4], %s1382_s27  ;;  %s1090_s28 = sshra.s32 %s750_s10, 4  ;;  %s1091_s28 = int_to_ptr.hbm [resolvable:$true] %s1090_s28 }
  0xa1   : > { %v1468_v23 = vld [vmem:[%s1417_s23 + $0x28] sm:$0xff]  ;;  %v1482_v28 = vld [vmem:[%s1386_s4 + $0x10] sm:$0xff]  ;;  %v1488_v30 = vld [vmem:[%s1393_s7 + $0x78] sm:$0xff]  ;;  %2546 = vst [vmem:[#allocation17_spill] sm:$0xff] %v1508_v37  ;;  %s1092_s19 = scalar_lea.hbm %s1091_s28, 32  ;;  %s1096_s6 = scalar_lea.hbm %s2468_s3, 64 }
  0xa2   : > { %v1485_v29 = vld [vmem:[%s1393_s7 + $0x70] sm:$0xff]  ;;  %2543 = vst [vmem:[#allocation14_spill] sm:$0xff] %v1488_v30  ;;  %v1491_v31 = vld [vmem:[%s1393_s7 + $0x80] sm:$0xff]  ;;  %v1497_v33 = vld [vmem:[%s1417_s23 + $0x48] sm:$0xff]  ;;  %v1660_v49 = vmul.f32 %v465_v46, %v1482_v28  ;;  %p1093_p6 = scmp.ne.s32.totalorder %s1091_s28, %s1092_s19  ;;  %p1097_p0 = scmp.lt.s32.totalorder %s1091_s28, %s2468_s3 }
  0xa3   : > { %2544 = vst [vmem:[#allocation15_spill] sm:$0xff] %v1491_v31  ;;  %v1494_v32 = vld [vmem:[%s1417_s23 + $0x40] sm:$0xff]  ;;  %v1500_v34 = vld [vmem:[%s1417_s23 + $0x50] sm:$0xff]  ;;  %v1514_v39 = vld [vmem:[%s1386_s4 + $0x18] sm:$0xff]  ;;  %p1098_p1 = scmp.lt.s32.totalorder %s1096_s6, %s1092_s19 }
  0xa4   : > { %2547 = vst [vmem:[#allocation18_spill] sm:$0xff] %v1511_v38  ;;  %v1517_v40 = vld [vmem:[%s1393_s7 + $0x88] sm:$0xff]  ;;  %v1520_v41 = vld [vmem:[%s1393_s7 + $0x90] sm:$0xff]  ;;  %v1523_v42 = vld [vmem:[%s1393_s7 + $0x98] sm:$0xff]  ;;  %p1094_p5 = pnand %p1093_p6, %p1225_p9 }
  0xa5   : > { %2548 = vst [vmem:[#allocation19_spill] sm:$0xff] %v1517_v40  ;;  %v1526_v43 = vld [vmem:[%s1417_s23 + $0x58] sm:$0xff]  ;;  %v1529_v44 = vld [vmem:[%s1417_s23 + $0x60] sm:$0xff]  ;;  %v1532_v45 = vld [vmem:[%s1417_s23 + $0x68] sm:$0xff]  ;;  %p1099_p10 = por %p1098_p1, %p1097_p0 }
  0xa6   : > { %2549 = vst [vmem:[#allocation20_spill] sm:$0xff] %v1520_v41  ;;  %v1544_v50 = vld [vmem:[%s1386_s4 + $0x20] sm:$0xff]  ;;  %v1550_v52 = vld [vmem:[%s1393_s7 + $0xa8] sm:$0xff]  ;;  %v1553_v53 = vld [vmem:[%s1393_s7 + $0xb0] sm:$0xff]  ;;  %p1095_p12 = pneg %p1094_p5 }
  0xa7   : > { %2550 = vst [vmem:[#allocation21_spill] sm:$0xff] %v1523_v42  ;;  %v1547_v51 = vld [vmem:[%s1393_s7 + $0xa0] sm:$0xff]  ;;  %v1556_v54 = vld [vmem:[%s1417_s23 + $0x70] sm:$0xff]  ;;  %v1559_v55 = vld [vmem:[%s1417_s23 + $0x78] sm:$0xff] }
  0xa8   : > { %2552 = vst [vmem:[#allocation23_spill] sm:$0xff] %v1550_v52  ;;  %v1562_v56 = vld [vmem:[%s1417_s23 + $0x80] sm:$0xff]  ;;  %v1574_v61 = vld [vmem:[%s1386_s4 + $0x28] sm:$0xff]  ;;  %v1577_v62 = vld [vmem:[%s1393_s7 + $0xb8] sm:$0xff]  ;;  %p1100_p13 = pnand %p1099_p10, %p1095_p12 }
  0xa9   : > { %2553 = vst [vmem:[#allocation24_spill] sm:$0xff] %v1553_v53  ;;  %v1580_v63 = vld [vmem:[%s1393_s7 + $0xc0] sm:$0xff]  ;;  %v1583_v0 = vld [vmem:[%s1393_s7 + $0xc8] sm:$0xff]  ;;  %v1589_v2 = vld [vmem:[%s1417_s23 + $0x90] sm:$0xff] }
  0xaa   : > { %2554 = vst [vmem:[#allocation25_spill] sm:$0xff] %v1556_v54  ;;  %v1586_v1 = vld [vmem:[%s1417_s23 + $0x88] sm:$0xff]  ;;  %v1592_v4 = vld [vmem:[%s1417_s23 + $0x98] sm:$0xff]  ;;  %v1603_v17 = vld [vmem:[%s1386_s4 + $0x30] sm:$0xff] }
  0xab   : > { %2555 = vst [vmem:[#allocation26_spill] sm:$0xff] %v1559_v55  ;;  %v1606_v59 = vld [vmem:[%s1393_s7 + $0xd0] sm:$0xff]  ;;  %v1609_v58 = vld [vmem:[%s1393_s7 + $0xd8] sm:$0xff]  ;;  %v1612_v5 = vld [vmem:[%s1393_s7 + $0xe0] sm:$0xff] }
  0xac   : > { %2556 = vst [vmem:[#allocation27_spill] sm:$0xff] %v1562_v56  ;;  %v1615_v57 = vld [vmem:[%s1417_s23 + $0xa0] sm:$0xff]  ;;  %v1618_v7 = vld [vmem:[%s1417_s23 + $0xa8] sm:$0xff]  ;;  %v1621_v48 = vld [vmem:[%s1417_s23 + $0xb0] sm:$0xff]  ;;  %v1690_v56 = vmul.f32 %v466_v47, %v1514_v39 }
  0xad   : > { %2557 = vst [vmem:[#allocation28_spill] sm:$0xff] %v1571_v60  ;;  %v1630_v60 = vmul.f32 %v464_v35, %v1456_v19  ;;  %v1633_v38 = vld [vmem:[%s1386_s4 + $0x38] sm:$0xff]  ;;  %v1636_v37 = vld [vmem:[%s1393_s7 + $0xe8] sm:$0xff]  ;;  %v1639_v12 = vld [vmem:[%s1393_s7 + $0xf0] sm:$0xff] }
  0xae   : > { %2558 = vst [vmem:[#allocation29_spill] sm:$0xff] %v1580_v63  ;;  %v1642_v36 = vld [vmem:[%s1393_s7 + $0xf8] sm:$0xff]  ;;  %v1648_v27 = vld [vmem:[%s1417_s23 + $0xc0] sm:$0xff]  ;;  %v1651_v11 = vld [vmem:[%s1417_s23 + $0xc8] sm:$0xff] }
  0xaf   : > { %2559 = vst [vmem:[#allocation30_spill] sm:$0xff] %v1583_v0  ;;  %v1645_v26 = vld [vmem:[%s1417_s23 + $0xb8] sm:$0xff]  ;;  %v1669_v19 = vld [vmem:[%s1393_s7 + $0x108] sm:$0xff]  ;;  %v1672_v54 = vld [vmem:[%s1393_s7 + $0x110] sm:$0xff] }
  0xb0   : > { %2560 = vst [vmem:[#allocation31_spill] sm:$0xff] %v1586_v1  ;;  %v1675_v35 = vld [vmem:[%s1417_s23 + $0xd0] sm:$0xff]  ;;  %v1678_v55 = vld [vmem:[%s1417_s23 + $0xd8] sm:$0xff]  ;;  %v1681_v3 = vld [vmem:[%s1417_s23 + $0xe0] sm:$0xff] }
  0xb1   : > { %2561 = vst [vmem:[#allocation32_spill] sm:$0xff] %v1589_v2  ;;  %v1693_v31 = vld [vmem:[%s1386_s4 + $0x48] sm:$0xff]  ;;  %v1696_v30 = vld [vmem:[%s1393_s7 + $0x118] sm:$0xff]  ;;  %v1699_v28 = vld [vmem:[%s1393_s7 + $0x120] sm:$0xff] }
  0xb2   : > { %2562 = vst [vmem:[#allocation33_spill] sm:$0xff] %v1592_v4  ;;  %v1702_v1 = vld [vmem:[%s1393_s7 + $0x128] sm:$0xff]  ;;  %v1708_v2 = vld [vmem:[%s1417_s23 + $0xf0] sm:$0xff]  ;;  %v2581_v4 = vsub.f32 %v1415_v6, %v1453_v18  ;;  %v1730_v39 = vld [vmem:[%s1393_s7 + $0x138] sm:$0xff] }
  0xb3   : > { %2563 = vst [vmem:[#allocation34_spill] sm:$0xff] %v1600_v16  ;;  %v1666_v16 = vld [vmem:[%s1393_s7 + $0x100] sm:$0xff]  ;;  %v1705_v46 = vld [vmem:[%s1417_s23 + $0xe8] sm:$0xff]  ;;  %v329_v41 = vld [vmem:[%s1386_s4 + $0x50] sm:$0xff] }
  0xb4   : > { %2564 = vst [vmem:[#allocation35_spill] sm:$0xff] %v1612_v5  ;;  %v1723_v42 = vmul.f32 %v2581_v4, %v1544_v50  ;;  %v1727_v40 = vld [vmem:[%s1393_s7 + $0x130] sm:$0xff]  ;;  %v1733_v47 = vld [vmem:[%s1393_s7 + $0x140] sm:$0xff]  ;;  %v2585_v4 = vsub.f32 %v1423_v8, %v1468_v23  ;;  %v330_v53 = vld [vmem:[%s1386_s4 + $0x58] sm:$0xff] }
  0xb5   : > { %2565 = vst [vmem:[#allocation36_spill] sm:$0xff] %v1618_v7  ;;  %v1736_v7 = vld [vmem:[%s1417_s23 + $0x100] sm:$0xff]  ;;  %v1758_v52 = vld [vmem:[%s1393_s7 + $0x148] sm:$0xff]  ;;  %v1761_v6 = vld [vmem:[%s1393_s7 + $0x150] sm:$0xff] }
  0xb6   : > { %2566 = vst [vmem:[#allocation37_spill] sm:$0xff] %v1621_v48  ;;  %v1742_v48 = vld [vmem:[%s1417_s23 + $0x110] sm:$0xff]  ;;  %v1764_v18 = vld [vmem:[%s1393_s7 + $0x158] sm:$0xff]  ;;  %v1770_v50 = vld [vmem:[%s1417_s23 + $0x120] sm:$0xff] }
  0xb7   : > { %2567 = vst [vmem:[#allocation38_spill] sm:$0xff] %v1630_v60  ;;  %v1663_v60 = vld [vmem:[%s1386_s4 + $0x40] sm:$0xff]  ;;  %v1792_v8 = vld [vmem:[%s1393_s7 + $0x168] sm:$0xff]  ;;  %v1798_v23 = vld [vmem:[%s1417_s23 + $0x130] sm:$0xff] }
  0xb8   : > { %2568 = vst [vmem:[#allocation39_spill] sm:$0xff] %v1636_v37  ;;  %v331_v0 = vld [vmem:[%s1386_s4 + $0x60] sm:$0xff]  ;;  %v333_v5 = vld [vmem:[%s1386_s4 + $0x70] sm:$0xff] }
  0xb9   : > { %2569 = vst [vmem:[#allocation40_spill] sm:$0xff] %v1642_v36  ;;  %v1789_v63 = vld [vmem:[%s1393_s7 + $0x160] sm:$0xff]  ;;  %v1825_v37 = vld [vmem:[%s1417_s23 + $0x150] sm:$0xff] }
  0xba   : > { %2570 = vst [vmem:[#allocation41_spill] sm:$0xff] %v1648_v27  ;;  %v1767_v27 = vld [vmem:[%s1417_s23 + $0x118] sm:$0xff]  ;;  %v337_v36 = vld [vmem:[%s1386_s4 + $0x90] sm:$0xff] }
  0xbb   : > { %2571 = vst [vmem:[#allocation42_spill] sm:$0xff] %v1651_v11  ;;  %v1773_v11 = vld [vmem:[%s1417_s23 + $0x128] sm:$0xff] }
  0xbc   : > { %2572 = vst [vmem:[#allocation43_spill] sm:$0xff] %v1660_v49  ;;  %v1711_v49 = vld [vmem:[%s1417_s23 + $0xf8] sm:$0xff] }
  0xbd   : > { %2573 = vst [vmem:[#allocation44_spill] sm:$0xff] %v1672_v54  ;;  %v1872_v54 = vld [vmem:[%s1417_s23 + $0x178] sm:$0xff] }
  0xbe   : > { %2574 = vst [vmem:[#allocation45_spill] sm:$0xff] %v1675_v35  ;;  %v1795_v35 = vld [vmem:[%s1393_s7 + $0x170] sm:$0xff] }
  0xbf   : > { %2575 = vst [vmem:[#allocation46_spill] sm:$0xff] %v1678_v55  ;;  %v1801_v55 = vld [vmem:[%s1417_s23 + $0x138] sm:$0xff] }
  0xc0   : > { %2576 = vst [vmem:[#allocation47_spill] sm:$0xff] %v1681_v3  ;;  %v332_v3 = vld [vmem:[%s1386_s4 + $0x68] sm:$0xff] }
  0xc1   : > { %2577 = vst [vmem:[#allocation48_spill] sm:$0xff] %v1690_v56  ;;  %v1739_v56 = vld [vmem:[%s1417_s23 + $0x108] sm:$0xff] }
  0xc2   : > { %2578 = vst [vmem:[#allocation49_spill] sm:$0xff] %v1705_v46  ;;  %v1822_v46 = vld [vmem:[%s1417_s23 + $0x148] sm:$0xff] }
  0xc3   : > { %2579 = vst [vmem:[#allocation50_spill] sm:$0xff] %v1708_v2  ;;  %v338_v2 = vld [vmem:[%s1386_s4 + $0x98] sm:$0xff] }
  0xc4   : > { %2580 = vst [vmem:[#allocation51_spill] sm:$0xff] %v1711_v49  ;;  %v336_v49 = vld [vmem:[%s1386_s4 + $0x88] sm:$0xff] }
  0xc5   : > { %2582 = vst [vmem:[#allocation52_spill] sm:$0xff] %v1723_v42  ;;  %v1754_v42 = vmul.f32 %v2585_v4, %v1574_v61  ;;  %v2588_v4 = vsub.f32 %v1426_v9, %v1471_v24  ;;  %v1804_v61 = vld [vmem:[%s1417_s23 + $0x140] sm:$0xff]  ;;  %v334_v9 = vld [vmem:[%s1386_s4 + $0x78] sm:$0xff] }
  0xc6   : > { %2583 = vst [vmem:[#allocation53_spill] sm:$0xff] %v1739_v56  ;;  %v1828_v24 = vld [vmem:[%s1417_s23 + $0x158] sm:$0xff]  ;;  %v1853_v56 = vld [vmem:[%s1417_s23 + $0x170] sm:$0xff] }
  0xc7   : > { %2584 = vst [vmem:[#allocation54_spill] sm:$0xff] %v1742_v48  ;;  %v1869_v48 = vld [vmem:[%s1393_s7 + $0x178] sm:$0xff] }
  0xc8   : > { %2586 = vst [vmem:[#allocation55_spill] sm:$0xff] %v1754_v42  ;;  %v1785_v42 = vmul.f32 %v2588_v4, %v1603_v17  ;;  %v2593_v4 = vsub.f32 %v1429_v10, %v1474_v25  ;;  %v1847_v17 = vld [vmem:[%s1417_s23 + $0x160] sm:$0xff]  ;;  %v1850_v10 = vld [vmem:[%s1417_s23 + $0x168] sm:$0xff]  ;;  %v498_v25 = vsub.f32 %v1696_v30, %v1767_v27  ;;  %v2608_v30 = vsub.f32 %v1465_v22, %v1532_v45  ;;  %v2618_v45 = vld [vmem:[#allocation19_spill] sm:$0xff] }
  0xc9   : > { %2587 = vst [vmem:[#allocation56_spill] sm:$0xff] %v1764_v18  ;;  %v351_v27 = vld [vmem:[%s1386_s4 + $0x100] sm:$0xff] }
  0xca   : > { %2589 = vst [vmem:[#allocation57_spill] sm:$0xff] %v1785_v42  ;;  %v1816_v42 = vmul.f32 %v2593_v4, %v1633_v38  ;;  %v2596_v38 = vsub.f32 %v1438_v13, %v1494_v32  ;;  %v342_v13 = vld [vmem:[%s1386_s4 + $0xb8] sm:$0xff]  ;;  %v2609_v32 = vld [vmem:[#allocation25_spill] sm:$0xff] }
  0xcb   : > { %2590 = vst [vmem:[#allocation58_spill] sm:$0xff] %v1789_v63 }
  0xcc   : > { %2591 = vst [vmem:[#allocation59_spill] sm:$0xff] %v1792_v8  ;;  %v1840_v4 = vmul.f32 %v2596_v38, %v1663_v60  ;;  %v2601_v60 = vsub.f32 %v1441_v14, %v1497_v33  ;;  %v2604_v14 = vsub.f32 %v1444_v15, %v1500_v34  ;;  %v340_v33 = vld [vmem:[%s1386_s4 + $0xa8] sm:$0xff]  ;;  %v2606_v15 = vsub.f32 %v1459_v20, %v1526_v43  ;;  %v349_v8 = vld [vmem:[%s1386_s4 + $0xf0] sm:$0xff] }
  0xcd   : > { %2592 = vst [vmem:[#allocation60_spill] sm:$0xff] %v1795_v35  ;;  %v2607_v20 = vsub.f32 %v1462_v21, %v1529_v44  ;;  %v2611_v44 = vld [vmem:[#allocation14_spill] sm:$0xff] }
  0xce   : > { %2594 = vst [vmem:[#allocation61_spill] sm:$0xff] %v1816_v42  ;;  %v335_v42 = vld [vmem:[%s1386_s4 + $0x80] sm:$0xff]  ;;  %v1865_v38 = vmul.f32 %v2601_v60, %v1693_v31  ;;  %v1883_v31 = vmul.f32 %v2604_v14, %v329_v41  ;;  %v341_v60 = vld [vmem:[%s1386_s4 + $0xb0] sm:$0xff]  ;;  %v1897_v34 = vmul.f32 %v2606_v15, %v330_v53  ;;  %v344_v14 = vld [vmem:[%s1386_s4 + $0xc8] sm:$0xff] }
  0xcf   : > { %2595 = vst [vmem:[#allocation62_spill] sm:$0xff] %v1828_v24  ;;  %v343_v41 = vld [vmem:[%s1386_s4 + $0xc0] sm:$0xff]  ;;  %v1911_v43 = vmul.f32 %v2607_v20, %v331_v0  ;;  %v346_v53 = vld [vmem:[%s1386_s4 + $0xd8] sm:$0xff]  ;;  %v348_v24 = vld [vmem:[%s1386_s4 + $0xe8] sm:$0xff] }
  0xd0   : > { %2597 = vst [vmem:[#allocation63_spill] sm:$0xff] %v1840_v4  ;;  %v339_v4 = vld [vmem:[%s1386_s4 + $0xa0] sm:$0xff]  ;;  %v2612_v0 = vld [vmem:[#allocation26_spill] sm:$0xff] }
  0xd1   : > { %2598 = vst [vmem:[#allocation64_spill] sm:$0xff] %v1847_v17  ;;  %v347_v15 = vld [vmem:[%s1386_s4 + $0xe0] sm:$0xff]  ;;  %v2613_v20 = vsub.f32 %v2611_v44, %v2612_v0  ;;  %v350_v17 = vld [vmem:[%s1386_s4 + $0xf8] sm:$0xff]  ;;  %v2624_v0 = vld [vmem:[#allocation21_spill] sm:$0xff] }
  0xd2   : > { %2599 = vst [vmem:[#allocation65_spill] sm:$0xff] %v1850_v10  ;;  %v1921_v10 = vmul.f32 %v2608_v30, %v332_v3  ;;  %v2619_v30 = vld [vmem:[#allocation31_spill] sm:$0xff] }
  0xd3   : > { %2600 = vst [vmem:[#allocation66_spill] sm:$0xff] %v1853_v56  ;;  %v2610_v56 = vsub.f32 %v1485_v29, %v2609_v32  ;;  %v1931_v35 = vmul.f32 %v2613_v20, %v334_v9  ;;  %v2620_v29 = vsub.f32 %v2618_v45, %v2619_v30  ;;  %v2622_v32 = vld [vmem:[#allocation32_spill] sm:$0xff]  ;;  %v2625_v20 = vld [vmem:[#allocation33_spill] sm:$0xff] }
  0xd4   : > { %2602 = vst [vmem:[#allocation67_spill] sm:$0xff] %v1869_v48  ;;  %v2616_v48 = vld [vmem:[#allocation27_spill] sm:$0xff]  ;;  %v2626_v63 = vsub.f32 %v2624_v0, %v2625_v20  ;;  %v2629_v45 = vld [vmem:[#allocation36_spill] sm:$0xff]  ;;  %v2636_v0 = vld [vmem:[#allocation41_spill] sm:$0xff] }
  0xd5   : > { %2603 = vst [vmem:[#allocation68_spill] sm:$0xff] %v1872_v54  ;;  %v1926_v21 = vmul.f32 %v2610_v56, %v333_v5  ;;  %v2615_v54 = vld [vmem:[#allocation15_spill] sm:$0xff]  ;;  %v1944_v56 = vmul.f32 %v2620_v29, %v336_v49  ;;  %v2621_v5 = vld [vmem:[#allocation20_spill] sm:$0xff] }
  0xd6   : > { %2605 = vst [vmem:[#allocation69_spill] sm:$0xff] %v1883_v31  ;;  %v345_v31 = vld [vmem:[%s1386_s4 + $0xd0] sm:$0xff]  ;;  %v2617_v22 = vsub.f32 %v2615_v54, %v2616_v48  ;;  %v2623_v44 = vsub.f32 %v2621_v5, %v2622_v32  ;;  %v1954_v18 = vmul.f32 %v2626_v63, %v338_v2  ;;  %v2627_v54 = vsub.f32 %v1547_v51, %v1615_v57  ;;  %v2631_v29 = vld [vmem:[#allocation24_spill] sm:$0xff]  ;;  %v2632_v5 = vld [vmem:[#allocation37_spill] sm:$0xff] }
  0xd7   : > { %2614 = vst [vmem:[#allocation25_spill] sm:$0xff] %v1931_v35  ;;  %v352_v35 = vld [vmem:[%s1386_s4 + $0x108] sm:$0xff]  ;;  %v353_v48 = vld [vmem:[%s1386_s4 + $0x110] sm:$0xff]  ;;  %v2633_v32 = vsub.f32 %v2631_v29, %v2632_v5  ;;  %v2634_v2 = vsub.f32 %v1577_v62, %v1645_v26  ;;  %v355_v51 = vld [vmem:[%s1386_s4 + $0x120] sm:$0xff] }
  0xd8   : > { %v1939_v3 = vmul.f32 %v2617_v22, %v335_v42  ;;  %v1949_v9 = vmul.f32 %v2623_v44, %v337_v36  ;;  %v354_v42 = vld [vmem:[%s1386_s4 + $0x118] sm:$0xff]  ;;  %v1962_v49 = vmul.f32 %v2627_v54, %v339_v4  ;;  %v356_v57 = vld [vmem:[%s1386_s4 + $0x128] sm:$0xff]  ;;  %v2643_v26 = vld [vmem:[#allocation46_spill] sm:$0xff] }
  0xd9   : > { %v2628_v22 = vld [vmem:[#allocation23_spill] sm:$0xff]  ;;  %v1972_v63 = vmul.f32 %v2633_v32, %v341_v60  ;;  %v1977_v44 = vmul.f32 %v2634_v2, %v342_v13  ;;  %v2635_v4 = vld [vmem:[#allocation29_spill] sm:$0xff]  ;;  %v2644_v13 = vsub.f32 %v1609_v58, %v2643_v26  ;;  %v357_v32 = vld [vmem:[%s1386_s4 + $0x130] sm:$0xff] }
  0xda   : > { %v2630_v30 = vsub.f32 %v2628_v22, %v2629_v45  ;;  %v2637_v20 = vsub.f32 %v2635_v4, %v2636_v0  ;;  %v2639_v22 = vld [vmem:[#allocation42_spill] sm:$0xff]  ;;  %v2641_v60 = vld [vmem:[#allocation45_spill] sm:$0xff]  ;;  %v2645_v2 = vld [vmem:[#allocation35_spill] sm:$0xff] }
  0xdb   : > { %v2642_v29 = vsub.f32 %v1606_v59, %v2641_v60  ;;  %v1999_v5 = vmul.f32 %v2644_v13, %v346_v53  ;;  %v2651_v59 = vld [vmem:[#allocation50_spill] sm:$0xff]  ;;  %v2653_v58 = vld [vmem:[#allocation40_spill] sm:$0xff]  ;;  %v2654_v53 = vld [vmem:[#allocation51_spill] sm:$0xff] }
  0xdc   : > { %v1967_v36 = vmul.f32 %v2630_v30, %v340_v33  ;;  %v1984_v54 = vmul.f32 %v2637_v20, %v343_v41  ;;  %v2638_v33 = vld [vmem:[#allocation30_spill] sm:$0xff]  ;;  %v2646_v41 = vld [vmem:[#allocation47_spill] sm:$0xff]  ;;  %v2655_v60 = vsub.f32 %v2653_v58, %v2654_v53  ;;  %v359_v13 = vld [vmem:[%s1386_s4 + $0x140] sm:$0xff] }
  0xdd   : > { %v2640_v45 = vsub.f32 %v2638_v33, %v2639_v22  ;;  %v1994_v62 = vmul.f32 %v2642_v29, %v345_v31  ;;  %v2647_v4 = vsub.f32 %v2645_v2, %v2646_v41  ;;  %v2648_v20 = vld [vmem:[#allocation39_spill] sm:$0xff]  ;;  %v2649_v33 = vld [vmem:[#allocation49_spill] sm:$0xff]  ;;  %v2652_v31 = vsub.f32 %v1639_v12, %v2651_v59  ;;  %v2659_v12 = vld [vmem:[#allocation44_spill] sm:$0xff] }
  0xde   : > { %v2020_v29 = vmul.f32 %v2655_v60, %v350_v17  ;;  %v358_v26 = vld [vmem:[%s1386_s4 + $0x138] sm:$0xff]  ;;  %v2039_v17 = vmul.f32 %v498_v25, %v354_v42  ;;  %v361_v59 = vld [vmem:[%s1386_s4 + $0x150] sm:$0xff]  ;;  %v2666_v42 = vsub.f32 %v1727_v40, %v1798_v23  ;;  %v2673_v40 = vld [vmem:[#allocation61_spill] sm:$0xff] }
  0xdf   : > { %v1989_v30 = vmul.f32 %v2640_v45, %v344_v14  ;;  %v2005_v0 = vmul.f32 %v2647_v4, %v347_v15  ;;  %v2650_v14 = vsub.f32 %v2648_v20, %v2649_v33  ;;  %v2015_v45 = vmul.f32 %v2652_v31, %v349_v8  ;;  %v2660_v8 = vld [vmem:[#allocation54_spill] sm:$0xff]  ;;  %v362_v25 = vld [vmem:[%s1386_s4 + $0x158] sm:$0xff] }
  0xe0   : > { %v2656_v15 = vsub.f32 %v1666_v16, %v1736_v7  ;;  %v2661_v20 = vsub.f32 %v2659_v12, %v2660_v8  ;;  %v2662_v7 = vsub.f32 %v1699_v28, %v1770_v50  ;;  %v2665_v58 = vld [vmem:[#allocation38_spill] sm:$0xff]  ;;  %v2059_v53 = vmul.f32 %v2666_v42, %v357_v32  ;;  %v2667_v60 = vld [vmem:[#allocation43_spill] sm:$0xff]  ;;  %v2668_v50 = vld [vmem:[#allocation48_spill] sm:$0xff] }
  0xe1   : > { %v2010_v22 = vmul.f32 %v2650_v14, %v348_v24  ;;  %v2657_v24 = vld [vmem:[#allocation53_spill] sm:$0xff]  ;;  %v2675_v42 = vld [vmem:[#allocation63_spill] sm:$0xff]  ;;  %v2707_v12 = vand.u32 2147483647, %v2665_v58 }
  0xe2   : > { %v2027_v2 = vmul.f32 %v2656_v15, %v351_v27  ;;  %v2658_v41 = vsub.f32 %v1669_v19, %v2657_v24  ;;  %v2037_v33 = vmul.f32 %v2661_v20, %v353_v48  ;;  %v360_v14 = vld [vmem:[%s1386_s4 + $0x148] sm:$0xff]  ;;  %v2046_v16 = vmul.f32 %v2662_v7, %v355_v51  ;;  %v2664_v27 = vld [vmem:[#allocation34_spill] sm:$0xff]  ;;  %v2669_v15 = vld [vmem:[#allocation52_spill] sm:$0xff] }
  0xe3   : > { %v2663_v19 = vsub.f32 %v1702_v1, %v1773_v11  ;;  %v363_v1 = vld [vmem:[%s1386_s4 + $0x160] sm:$0xff]  ;;  %v2670_v11 = vsub.f32 %v1730_v39, %v1801_v55  ;;  %v2672_v8 = vld [vmem:[#allocation57_spill] sm:$0xff]  ;;  %v2674_v7 = vsub.f32 %v1733_v47, %v1804_v61  ;;  %v365_v39 = vld [vmem:[%s1386_s4 + $0x170] sm:$0xff]  ;;  %v2706_v31 = vand.u32 2147483647, %v2664_v27 }
  0xe4   : > { %v2032_v4 = vmul.f32 %v2658_v41, %v352_v35  ;;  %v2671_v41 = vld [vmem:[#allocation55_spill] sm:$0xff]  ;;  %v364_v32 = vld [vmem:[%s1386_s4 + $0x168] sm:$0xff] }
  0xe5   : > { %v2051_v35 = vmul.f32 %v2663_v19, %v356_v57  ;;  %v2068_v57 = vmul.f32 %v2670_v11, %v358_v26  ;;  %v2077_v19 = vmul.f32 %v2674_v7, %v359_v13  ;;  %v2676_v28 = vld [vmem:[#allocation69_spill] sm:$0xff]  ;;  %v2677_v26 = vsub.f32 %v1758_v52, %v1822_v46  ;;  %v366_v61 = vld [vmem:[%s1386_s4 + $0x178] sm:$0xff]  ;;  %v2680_v46 = vld [vmem:[#allocation56_spill] sm:$0xff] }
  0xe6   : > { %v2678_v13 = vsub.f32 %v1761_v6, %v1825_v37  ;;  %v2679_v24 = vld [vmem:[#allocation25_spill] sm:$0xff]  ;;  %v2683_v37 = vld [vmem:[#allocation22_spill] sm:$0xff]  ;;  %v2684_v6 = vld [vmem:[#allocation12_spill] sm:$0xff] }
  0xe7   : > { %v2086_v11 = vmul.f32 %v2677_v26, %v360_v14  ;;  %v2681_v14 = vld [vmem:[#allocation62_spill] sm:$0xff]  ;;  %vm621_vm0 = vcmp.lt.s32.totalorder %v2684_v6, %v2683_v37  ;;  %v2170_v52 = vadd.s32 56, %v2684_v6 }
  0xe8   : > { %v2095_v7 = vmul.f32 %v2678_v13, %v361_v59  ;;  %v2682_v26 = vsub.f32 %v2680_v46, %v2681_v14  ;;  %v2685_v59 = vld [vmem:[#allocation58_spill] sm:$0xff]  ;;  %v2686_v13 = vld [vmem:[#allocation64_spill] sm:$0xff]  ;;  %v2689_v14 = vld [vmem:[#allocation59_spill] sm:$0xff]  ;;  %v633_v48 = vsel %vm621_vm0, %v2706_v31, 0.0  ;;  %v634_v46 = vsel %vm621_vm0, %v2707_v12, 0.0 }
  0xe9   : > { %v2687_v55 = vsub.f32 %v2685_v59, %v2686_v13  ;;  %v2693_v59 = vld [vmem:[#allocation60_spill] sm:$0xff]  ;;  %v2710_v31 = vand.u32 2147483647, %v2671_v41  ;;  %v2711_v12 = vand.u32 2147483647, %v2672_v8  ;;  %vm628_vm7 = vcmp.lt.s32.totalorder %v2170_v52, %v2683_v37 }
  0xea   : > { %v2103_v23 = vmul.f32 %v2682_v26, %v362_v25  ;;  %v2690_v26 = vld [vmem:[#allocation65_spill] sm:$0xff]  ;;  %v2176_v25 = vadd.s32 72, %v2684_v6 }
  0xeb   : > { %v2113_v51 = vmul.f32 %v2687_v55, %v363_v1  ;;  %v2691_v20 = vsub.f32 %v2689_v14, %v2690_v26  ;;  %v2694_v1 = vld [vmem:[#allocation66_spill] sm:$0xff]  ;;  %v2697_v14 = vld [vmem:[#allocation67_spill] sm:$0xff] }
  0xec   : > { %v2695_v55 = vsub.f32 %v2693_v59, %v2694_v1  ;;  %v2703_v1 = vld [vmem:[#allocation17_spill] sm:$0xff]  ;;  %v2705_v59 = vld [vmem:[#allocation28_spill] sm:$0xff]  ;;  %vm630_vm9 = vcmp.lt.s32.totalorder %v2176_v25, %v2683_v37 }
  0xed   : > { %2688 = vst [vmem:[#allocation14_spill] sm:$0xff] %v2113_v51  ;;  %v2121_v47 = vmul.f32 %v2691_v20, %v364_v32  ;;  %v2698_v20 = vld [vmem:[#allocation68_spill] sm:$0xff]  ;;  %vm624_vm3 = vcmp.lt.s32.totalorder %v2703_v1, %v2683_v37  ;;  %vm626_vm5 = vcmp.lt.s32.totalorder %v2705_v59, %v2683_v37 }
  0xee   : > { %v2129_v13 = vmul.f32 %v2695_v55, %v365_v39  ;;  %v2699_v32 = vsub.f32 %v2697_v14, %v2698_v20  ;;  %v2701_v55 = vld [vmem:[#allocation13_spill] sm:$0xff]  ;;  %v2702_v20 = vld [vmem:[#allocation16_spill] sm:$0xff]  ;;  %v2704_v14 = vld [vmem:[#allocation18_spill] sm:$0xff]  ;;  %v614_v39 = vadd.s32 48, %v2684_v6 }
  0xef   : > { %2692 = vst [vmem:[#allocation26_spill] sm:$0xff] %v2121_v47  ;;  %vm622_vm1 = vcmp.lt.s32.totalorder %v2701_v55, %v2683_v37  ;;  %vm623_vm2 = vcmp.lt.s32.totalorder %v2702_v20, %v2683_v37  ;;  %vm625_vm4 = vcmp.lt.s32.totalorder %v2704_v14, %v2683_v37  ;;  %v2709_v47 = vand.u32 2147483647, %v2669_v15 }
  0xf0   : > { %2696 = vst [vmem:[#allocation15_spill] sm:$0xff] %v2129_v13  ;;  %v2137_v26 = vmul.f32 %v2699_v32, %v366_v61  ;;  %v2173_v61 = vadd.s32 64, %v2684_v6  ;;  %v2179_v32 = vadd.s32 80, %v2684_v6  ;;  %v638_v58 = vsel %vm622_vm1, %v2710_v31, 0.0 }
  0xf1   : > { %v637_v27 = vsel %vm622_vm1, %v2709_v47, 0.0  ;;  %vm627_vm6 = vcmp.lt.s32.totalorder %v614_v39, %v2683_v37  ;;  %v2712_v15 = vand.u32 2147483647, %v2668_v50  ;;  %v2713_v47 = vand.u32 2147483647, %v2673_v40 }
  0xf2   : > { %2700 = vst [vmem:[#allocation27_spill] sm:$0xff] %v2137_v26  ;;  %v2708_v26 = vand.u32 2147483647, %v2667_v60  ;;  %v639_v60 = vsel %vm622_vm1, %v2711_v12, 0.0  ;;  %v2714_v31 = vand.u32 2147483647, %v2675_v42  ;;  %vm629_vm8 = vcmp.lt.s32.totalorder %v2173_v61, %v2683_v37 }
  0xf3   : > { %v636_v41 = vsel %vm621_vm0, %v2712_v15, 0.0  ;;  %v640_v8 = vsel %vm622_vm1, %v2713_v47, 0.0  ;;  %v2715_v50 = vand.u32 2147483647, %v1865_v38  ;;  %v2716_v40 = vand.u32 2147483647, %v2676_v28 }
  0xf4   : > { %v635_v13 = vsel %vm621_vm0, %v2708_v26, 0.0  ;;  %v2212_v26 = vadd.s32 88, %v2684_v6  ;;  %v641_v12 = vsel %vm623_vm2, %v2714_v31, 0.0  ;;  %v2717_v42 = vand.u32 2147483647, %v1897_v34 }
  0xf5   : > { %v642_v6 = vsel %vm623_vm2, %v2715_v50, 0.0  ;;  %v643_v55 = vsel %vm623_vm2, %v2716_v40, 0.0  ;;  %v681_v38 = vadd.f32 %v637_v27, %v633_v48  ;;  %v692_v47 = vadd.f32 %v638_v58, %v634_v46 }
  0xf6   : > { %v644_v15 = vsel %vm623_vm2, %v2717_v42, 0.0  ;;  %v703_v31 = vadd.f32 %v639_v60, %v635_v13  ;;  %v2718_v50 = vand.u32 2147483647, %v1911_v43  ;;  %v2719_v40 = vand.u32 2147483647, %v1921_v10 }
  0xf7   : > { %v2720_v34 = vand.u32 2147483647, %v1926_v21  ;;  %v714_v46 = vadd.f32 %v640_v8, %v636_v41  ;;  %v2721_v43 = vand.u32 2147483647, %v2679_v24  ;;  %v682_v13 = vadd.f32 %v681_v38, %v641_v12 }
  0xf8   : > { %v645_v28 = vsel %vm624_vm3, %v2718_v50, 0.0  ;;  %v646_v51 = vsel %vm624_vm3, %v2719_v40, 0.0  ;;  %v693_v20 = vadd.f32 %v692_v47, %v642_v6  ;;  %v704_v27 = vadd.f32 %v703_v31, %v643_v55 }
  0xf9   : > { %v647_v48 = vsel %vm624_vm3, %v2720_v34, 0.0  ;;  %v648_v10 = vsel %vm624_vm3, %v2721_v43, 0.0  ;;  %v2722_v58 = vand.u32 2147483647, %v1939_v3  ;;  %v2723_v60 = vand.u32 2147483647, %v1944_v56 }
  0xfa   : > { %v2724_v24 = vand.u32 2147483647, %v1949_v9  ;;  %v715_v8 = vadd.f32 %v714_v46, %v644_v15  ;;  %vm631_vm10 = vcmp.lt.s32.totalorder %v2179_v32, %v2683_v37  ;;  %v2725_v3 = vand.u32 2147483647, %v1954_v18 }
  0xfb   : > { %v649_v21 = vsel %vm625_vm4, %v2722_v58, 0.0  ;;  %v650_v41 = vsel %vm625_vm4, %v2723_v60, 0.0  ;;  %v683_v12 = vadd.f32 %v682_v13, %v645_v28  ;;  %v694_v6 = vadd.f32 %v693_v20, %v646_v51 }
  0xfc   : > { %v651_v1 = vsel %vm625_vm4, %v2724_v24, 0.0  ;;  %v652_v56 = vsel %vm625_vm4, %v2725_v3, 0.0  ;;  %v705_v55 = vadd.f32 %v704_v27, %v647_v48  ;;  %v2726_v42 = vand.u32 2147483647, %v1962_v49 }
  0xfd   : > { %v2727_v15 = vand.u32 2147483647, %v1967_v36  ;;  %v2728_v18 = vand.u32 2147483647, %v1972_v63  ;;  %v716_v51 = vadd.f32 %v715_v8, %v648_v10  ;;  %vm632_vm11 = vcmp.lt.s32.totalorder %v2212_v26, %v2683_v37 }
  0xfe   : > { %v653_v9 = vsel %vm626_vm5, %v2726_v42, 0.0  ;;  %v2729_v49 = vand.u32 2147483647, %v1977_v44  ;;  %v684_v47 = vadd.f32 %v683_v12, %v649_v21  ;;  %v695_v31 = vadd.f32 %v694_v6, %v650_v41 }
  0xff   : > { %v654_v38 = vsel %vm626_vm5, %v2727_v15, 0.0  ;;  %v655_v14 = vsel %vm626_vm5, %v2728_v18, 0.0  ;;  %v706_v50 = vadd.f32 %v705_v55, %v651_v1  ;;  %v2730_v28 = vand.u32 2147483647, %v1984_v54 }
 0x100   : > { %v656_v36 = vsel %vm626_vm5, %v2729_v49, 0.0  ;;  %v2731_v40 = vand.u32 2147483647, %v1989_v30  ;;  %v2732_v48 = vand.u32 2147483647, %v1994_v62  ;;  %v717_v59 = vadd.f32 %v716_v51, %v652_v56 }
 0x101   : > { %v657_v63 = vsel %vm627_vm6, %v2730_v28, 0.0  ;;  %v2733_v46 = vand.u32 2147483647, %v1999_v5  ;;  %v685_v54 = vadd.f32 %v684_v47, %v653_v9  ;;  %v696_v10 = vadd.f32 %v695_v31, %v654_v38 }
 0x102   : > { %v658_v34 = vsel %vm627_vm6, %v2731_v40, 0.0  ;;  %v659_v44 = vsel %vm627_vm6, %v2732_v48, 0.0  ;;  %v707_v13 = vadd.f32 %v706_v50, %v655_v14  ;;  %v2734_v20 = vand.u32 2147483647, %v2005_v0 }
 0x103   : > { %v660_v43 = vsel %vm627_vm6, %v2733_v46, 0.0  ;;  %v2735_v62 = vand.u32 2147483647, %v2010_v22  ;;  %v2736_v5 = vand.u32 2147483647, %v2015_v45  ;;  %v718_v58 = vadd.f32 %v717_v59, %v656_v36 }
 0x104   : > { %v661_v30 = vsel %vm628_vm7, %v2734_v20, 0.0  ;;  %v2737_v21 = vand.u32 2147483647, %v2020_v29  ;;  %v686_v60 = vadd.f32 %v685_v54, %v657_v63  ;;  %v697_v22 = vadd.f32 %v696_v10, %v658_v34  ;;  %v2750_v63 = vld [vmem:[#allocation14_spill] sm:$0xff] }
 0x105   : > { %v662_v27 = vsel %vm628_vm7, %v2735_v62, 0.0  ;;  %v663_v39 = vsel %vm628_vm7, %v2736_v5, 0.0  ;;  %v708_v41 = vadd.f32 %v707_v13, %v659_v44  ;;  %v2738_v24 = vand.u32 2147483647, %v2027_v2  ;;  %v2752_v34 = vld [vmem:[#allocation26_spill] sm:$0xff] }
 0x106   : > { %v664_v0 = vsel %vm628_vm7, %v2737_v21, 0.0  ;;  %v2739_v1 = vand.u32 2147483647, %v2032_v4  ;;  %v2740_v8 = vand.u32 2147483647, %v2037_v33  ;;  %v719_v3 = vadd.f32 %v718_v58, %v660_v43  ;;  %v2756_v43 = vld [vmem:[#allocation27_spill] sm:$0xff] }
 0x107   : > { %v665_v45 = vsel %vm629_vm8, %v2738_v24, 0.0  ;;  %v2741_v2 = vand.u32 2147483647, %v2039_v17  ;;  %v687_v12 = vadd.f32 %v686_v60, %v661_v30  ;;  %v698_v4 = vadd.f32 %v697_v22, %v662_v27 }
 0x108   : > { %v666_v29 = vsel %vm629_vm8, %v2739_v1, 0.0  ;;  %v667_v52 = vsel %vm629_vm8, %v2740_v8, 0.0  ;;  %v709_v6 = vadd.f32 %v708_v41, %v663_v39  ;;  %v2742_v55 = vand.u32 2147483647, %v2046_v16 }
 0x109   : > { %v668_v56 = vsel %vm629_vm8, %v2741_v2, 0.0  ;;  %v2743_v42 = vand.u32 2147483647, %v2051_v35  ;;  %v2744_v17 = vand.u32 2147483647, %v2059_v53  ;;  %v720_v15 = vadd.f32 %v719_v3, %v664_v0 }
 0x10a   : > { %v669_v33 = vsel %vm630_vm9, %v2742_v55, 0.0  ;;  %v2745_v16 = vand.u32 2147483647, %v2068_v57  ;;  %v688_v18 = vadd.f32 %v687_v12, %v665_v45  ;;  %v699_v35 = vadd.f32 %v698_v4, %v666_v29 }
 0x10b   : > { %v670_v9 = vsel %vm630_vm9, %v2743_v42, 0.0  ;;  %v671_v61 = vsel %vm630_vm9, %v2744_v17, 0.0  ;;  %v710_v14 = vadd.f32 %v709_v6, %v667_v52  ;;  %v2746_v51 = vand.u32 2147483647, %v2077_v19 }
 0x10c   : > { %v672_v38 = vsel %vm630_vm9, %v2745_v16, 0.0  ;;  %v2747_v49 = vand.u32 2147483647, %v2086_v11  ;;  %v2748_v36 = vand.u32 2147483647, %v2095_v7  ;;  %v721_v47 = vadd.f32 %v720_v15, %v668_v56 }
 0x10d   : > { %v673_v53 = vsel %vm631_vm10, %v2746_v51, 0.0  ;;  %v2749_v31 = vand.u32 2147483647, %v2103_v23  ;;  %v689_v50 = vadd.f32 %v688_v18, %v669_v33  ;;  %v700_v28 = vadd.f32 %v699_v35, %v670_v9  ;;  %v2754_v23 = vld [vmem:[#allocation15_spill] sm:$0xff] }
 0x10e   : > { %v674_v57 = vsel %vm631_vm10, %v2747_v49, 0.0  ;;  %v675_v25 = vsel %vm631_vm10, %v2748_v36, 0.0  ;;  %v711_v11 = vadd.f32 %v710_v14, %v671_v61  ;;  %v2751_v40 = vand.u32 2147483647, %v2750_v63 }
 0x10f   : > { %v676_v19 = vsel %vm631_vm10, %v2749_v31, 0.0  ;;  %v2753_v48 = vand.u32 2147483647, %v2752_v34  ;;  %v2755_v59 = vand.u32 2147483647, %v2754_v23  ;;  %v722_v46 = vadd.f32 %v721_v47, %v672_v38 }
 0x110   : > { %v677_v7 = vsel %vm632_vm11, %v2751_v40, 0.0  ;;  %v2757_v54 = vand.u32 2147483647, %v2756_v43  ;;  %v690_v13 = vadd.f32 %v689_v50, %v673_v53  ;;  %v701_v20 = vadd.f32 %v700_v28, %v674_v57 }
 0x111   : > { %v678_v44 = vsel %vm632_vm11, %v2753_v48, 0.0  ;;  %v679_v32 = vsel %vm632_vm11, %v2755_v59, 0.0  ;;  %v712_v30 = vadd.f32 %v711_v11, %v675_v25  ;;  %v723_v62 = vadd.f32 %v722_v46, %v676_v19 }
 0x112   : > { %v680_v10 = vsel %vm632_vm11, %v2757_v54, 0.0  ;;  %v691_v27 = vadd.f32 %v690_v13, %v677_v7  ;;  %v702_v5 = vadd.f32 %v701_v20, %v678_v44 }
 0x113   : > { %v713_v39 = vadd.f32 %v712_v30, %v679_v32  ;;  %v724_v58 = vadd.f32 %v723_v62, %v680_v10 }
 0x114   : > { %729 = vst [vmem:[%s298_s8] sm:$0xff] %v691_v27 }
 0x115   : > { %730 = vst [vmem:[%s298_s8 + $0x8] sm:$0xff] %v702_v5 }
 0x116   : > { %731 = vst [vmem:[%s298_s8 + $0x10] sm:$0xff] %v713_v39 }
 0x117   : > { %732 = vst [vmem:[%s298_s8 + $0x18] sm:$0xff] %v724_v58 }
 0x118   : > { %1103 = shalt.err (!%p1100_p13)
}
 0x119   : > { %914 = dma.vmem_to_hbm [thread:$0]  (%p1225_p9), %s748_s11, 512, %s750_s10, %s734_s26  }
 0x11a PF: > { %s761_s27 = sand.u32 1, %s1134_s12   ;;  %p2758_p2 = scmp.ne.s32.totalorder %s2537_s25, 0 }
 0x11b   : > { %p2759_p3 = scmp.ge.s32.totalorder %s1146_s15, 2  ;;  %s762_s23 = scalar_lea.sflag [#allocation4], %s761_s27 }
 0x11d   : > { %p917_p11 = pnand %p2759_p3, %p2758_p2 }
 0x11f   : > { %p918_p4 = pneg %p917_p11 }
 0x121   : > { %1129 = dma.done.wait (%p918_p4), %s762_s23, 512  }
 0x122   : > { %1131 = vsyncadd (%p918_p4), %s762_s23, 4294966784  ;;  %p19_p7 = scmp.ge.s32.totalorder %s1202_s18, 4   ;;  %s2760_s12 = smov %s1138_s13 }
 0x123   : > { %s2761_s13 = smov %s1142_s14  ;;  %s2762_s14 = smov %s1214_s21 }
 0x124   : > { %s2763_s15 = smov %s1202_s18  ;;  %21 = sbr.rel (!%p19_p7) target bundleno = 7 (0x7), region = 101 }
 0x129   :  { %768 = vsyncpa [#allocation3], 1 }
 0x12a   :  { %770 = vsyncpa [#allocation3 + $0x1], 1 }
 0x12b   :  { %771 = vsyncpa [#allocation6], 1 }
 0x12c   :  { %773 = vsyncpa [#allocation6 + $0x1], 1 }
 0x12d   :  { %774 = vsyncpa [#allocation4], 1 }
 0x12e   :  { %776 = vsyncpa [#allocation4 + $0x1], 1 }

</bundles_post_ra>
